<compile_context>
chip_gen: v6e
topology: v6e:2x2x1
jax: 0.10.0
libtpu: 0.0.40
codegen_flags: <defaults>
</compile_context>

<pallas_src>
import functools
import math

import jax
import jax.numpy as jnp
from jax.experimental import pallas as pl
from jax.experimental.pallas import tpu as pltpu

_LANES = 1024          # lane-dense last dim: large multiple of 128 -> plain vst, no vst.msk
_MAX_BLOCK_ROWS = 512  # (512, 1024) f32 tile = 2 MiB; fits default scoped VMEM on all chips


def _stoch_binary_kernel(x_ref, t_ref, o_ref, *, slope):
    # t_ref holds pre-drawn thresholds ~ U[-1, 1).  out = 1  iff  t < slope * x.
    x = x_ref[...].astype(jnp.float32)          # widen in-kernel (native-dtype HBM reads)
    keep = t_ref[...] < slope * x               # slope folded in as a compile-time constant
    o_ref[...] = jnp.where(keep, 1.0, 0.0).astype(o_ref.dtype)


def stochastic_binary_activation(x, slope=1.0, *, key, out_dtype=None):
    """Forward pass of StochasticBinaryActivation (estimator='ST').

    x: float array of any shape (e.g. NCHW activations), kept in its native dtype.
    Returns {0, 1} samples of Bernoulli(hardsigmoid(slope * x)) with x's shape.
    """
    out_dtype = x.dtype if out_dtype is None else out_dtype
    orig_shape = x.shape
    total = math.prod(orig_shape)

    # Flatten to a lane-dense (rows, 1024) slab; pad rows up to the block size.
    rows = -(-total // _LANES)
    rows8 = -(-rows // 8) * 8                       # sublane multiple
    block_rows = min(_MAX_BLOCK_ROWS, rows8)        # multiple of 8 in both branches
    total_rows = -(-rows8 // block_rows) * block_rows
    pad = total_rows * _LANES - total

    x2d = jnp.pad(x.reshape(-1), (0, pad)).reshape(total_rows, _LANES)

    # Bernoulli thresholds drawn on the host at the padded shape.
    # TODO(synk): on real TPU silicon these thresholds could be generated in-kernel with
    # pltpu.prng_seed / pltpu.prng_random_bits (seeded per-tile with program_id) to halve
    # HBM read traffic; host-side jax.random is used here because the Mosaic PRNG
    # primitives have no CPU/interpret lowering.
    t2d = jax.random.uniform(key, (total_rows, _LANES), dtype=jnp.float32,
                             minval=-1.0, maxval=1.0)

    block = pl.BlockSpec((block_rows, _LANES), lambda i: (i, 0))

    out2d = pl.pallas_call(
        functools.partial(_stoch_binary_kernel, slope=float(slope)),
        out_shape=jax.ShapeDtypeStruct((total_rows, _LANES), out_dtype),
        grid=(total_rows // block_rows,),
        in_specs=[block, block],
        out_specs=block,
        compiler_params=pltpu.CompilerParams(
            dimension_semantics=("parallel",)),
    )(x2d, t2d)

    return out2d.reshape(-1)[:total].reshape(orig_shape)


if __name__ == "__main__":
    key = jax.random.PRNGKey(0)
    kx, ksample = jax.random.split(key)
    x = jax.random.normal(kx, (2, 4, 16, 16), dtype=jnp.float32)  # NCHW

    out = stochastic_binary_activation(x, slope=1.0, key=ksample)
    out = jax.block_until_ready(out)

    # Sanity checks: shape/dtype preserved and output is strictly binary.
    assert out.shape == x.shape
    assert out.dtype == x.dtype
    assert bool(jnp.all((out == 0.0) | (out == 1.0)))

    # Statistical sanity: sample mean tracks mean of hardsigmoid(x) (2048 samples).
    p_ref = jnp.clip((x + 1.0) * 0.5, 0.0, 1.0)
    assert abs(float(out.mean()) - float(p_ref.mean())) < 0.1

    print("KERNEL_OK")
</pallas_src>

<mosaic_0001>
module attributes {stable_mosaic.version = 11 : i64} {
  func.func @_stoch_binary_kernel(%arg0: i32, %arg1: memref<8x1024xf32, #tpu.memory_space<vmem>>, %arg2: memref<8x1024xf32, #tpu.memory_space<vmem>>, %arg3: memref<8x1024xf32, #tpu.memory_space<vmem>>) attributes {dimension_semantics = [#tpu.dimension_semantics<parallel>], iteration_bounds = array<i64: 1>, scalar_prefetch = 0 : i64, scratch_operands = 0 : i64, tpu.core_type = #tpu.core_type<tc>, window_params = [{transform_indices = @transform_0, window_bounds = array<i64: 8, 1024>}, {transform_indices = @transform_1, window_bounds = array<i64: 8, 1024>}, {transform_indices = @transform_2, window_bounds = array<i64: 8, 1024>}]} {
    %c0 = arith.constant 0 : index
    %c0_0 = arith.constant 0 : index
    %0 = vector.load %arg1[%c0, %c0_0] : memref<8x1024xf32, #tpu.memory_space<vmem>>, vector<8x1024xf32>
    %c0_1 = arith.constant 0 : index
    %c0_2 = arith.constant 0 : index
    %1 = vector.load %arg2[%c0_1, %c0_2] : memref<8x1024xf32, #tpu.memory_space<vmem>>, vector<8x1024xf32>
    %cst = arith.constant 1.000000e+00 : f32
    %2 = vector.broadcast %cst : f32 to vector<8x1024xf32>
    %3 = arith.mulf %2, %0 : vector<8x1024xf32>
    %4 = arith.cmpf olt, %1, %3 : vector<8x1024xf32>
    %cst_3 = arith.constant 1.000000e+00 : f32
    %cst_4 = arith.constant 0.000000e+00 : f32
    %5 = vector.broadcast %cst_3 : f32 to vector<8x1024xf32>
    %6 = vector.broadcast %cst_4 : f32 to vector<8x1024xf32>
    %7 = arith.select %4, %5, %6 : vector<8x1024xi1>, vector<8x1024xf32>
    %c0_5 = arith.constant 0 : index
    %c0_6 = arith.constant 0 : index
    %8 = vector.load %arg3[%c0_5, %c0_6] : memref<8x1024xf32, #tpu.memory_space<vmem>>, vector<8x1024xf32>
    tpu.vector_store %arg3[%c0_5, %c0_6], %7 {strides = array<i32>} : memref<8x1024xf32, #tpu.memory_space<vmem>>, vector<8x1024xf32>,
    return
  }
  func.func @transform_0(%arg0: i32) -> (i32, i32) {
    %c0_i32 = arith.constant 0 : i32
    %c0_i32_0 = arith.constant 0 : i32
    return %arg0, %c0_i32 : i32, i32
  }
  func.func @transform_1(%arg0: i32) -> (i32, i32) {
    %c0_i32 = arith.constant 0 : i32
    %c0_i32_0 = arith.constant 0 : i32
    return %arg0, %c0_i32 : i32, i32
  }
  func.func @transform_2(%arg0: i32) -> (i32, i32) {
    %c0_i32 = arith.constant 0 : i32
    %c0_i32_0 = arith.constant 0 : i32
    return %arg0, %c0_i32 : i32, i32
  }
}

</mosaic_0001>

<bundles_post_ra>
// kernel: tpu_custom_call.1
= control target key start
LH: loop header
LB: loop body
LE: loop exit
PB: predicated region body
PF: predicated region fallthrough
CT: control target
= control target key end

     0   :  { %7 = vsyncpa [#allocation3], 0  ;;  %s190_s0 = inlined_call_operand.hbm [shape: f32[8,1024], index: 0, kind: input, shape index: {}]   ;;  %s191_s1 = inlined_call_operand.hbm [shape: f32[8,1024], index: 1, kind: input, shape index: {}]   ;;  %s192_s2 = inlined_call_operand.hbm [shape: f32[8,1024], index: 2, kind: output, shape index: {}]  }
   0x1   :  { %8 = vsyncpa [#allocation6], 0 }
   0x2   :  { %9 = vsyncpa [#allocation4], 0  ;;  %s162_s9 = smov [#allocation2]   ;;  %s163_s11 = smov [#allocation5]  }
   0x3   :  { %s16_s10 = sshll.u32 %s162_s9, 4  ;;  %s26_s12 = sshll.u32 %s163_s11, 4  ;;  %s17_s10 = int_to_ptr.vmem [resolvable:$true] %s16_s10  ;;  %s27_s12 = int_to_ptr.vmem [resolvable:$true] %s26_s12 }
   0x4   :  { %s104_s13 = scalar_lea.vmem %s17_s10, 1024  ;;  %p109_p1 = scmp.lt.s32.totalorder %s17_s10, %s17_s10 }
   0x5   :  { %p105_p0 = scmp.ne.s32.totalorder %s17_s10, %s104_s13  ;;  %p110_p2 = scmp.lt.s32.totalorder %s104_s13, %s104_s13 }
   0x7   :  { %p111_p3 = por %p110_p2, %p109_p1 }
   0x9   :  { %p112_p4 = pnand %p111_p3, %p105_p0 }
   0xb   :  { %115 = shalt.err (!%p112_p4)
}
   0xc   :  { %19 = dma.hbm_to_vmem [thread:$0]  %s190_s0, 1024, %s17_s10, [#allocation3]  }
   0xd   :  { %s124_s16 = scalar_lea.vmem %s27_s12, 1024  ;;  %p129_p6 = scmp.lt.s32.totalorder %s27_s12, %s27_s12 }
   0xe   :  { %p125_p5 = scmp.ne.s32.totalorder %s27_s12, %s124_s16  ;;  %p130_p7 = scmp.lt.s32.totalorder %s124_s16, %s124_s16 }
  0x10   :  { %p131_p8 = por %p130_p7, %p129_p6 }
  0x12   :  { %p132_p9 = pnand %p131_p8, %p125_p5 }
  0x14   :  { %135 = shalt.err (!%p132_p9)
}
  0x15   :  { %29 = dma.hbm_to_vmem [thread:$0]  %s191_s1, 1024, %s27_s12, [#allocation6]  }
  0x16   :  { %156 = dma.done.wait [#allocation3], 1024  }
  0x17   :  { %157 = vsyncadd [#allocation3], 4294966272 }
  0x18   :  { %158 = dma.done.wait [#allocation6], 1024  }
  0x19   :  { %159 = vsyncadd [#allocation6], 4294966272  ;;  %v36_v0 = vld [vmem:[#allocation2] sm:$0xff]  ;;  %v37_v2 = vld [vmem:[#allocation2 + $0x8] sm:$0xff]  ;;  %v164_v6 = vmov 0.0   ;;  %s165_s0 = smov [#allocation7]  }
  0x1a   :  { %v44_v1 = vld [vmem:[#allocation5] sm:$0xff]  ;;  %v45_v3 = vld [vmem:[#allocation5 + $0x8] sm:$0xff]  ;;  %v38_v4 = vld [vmem:[#allocation2 + $0x10] sm:$0xff]  ;;  %s82_s1 = sshll.u32 %s165_s0, 4  ;;  %s83_s1 = int_to_ptr.vmem [resolvable:$true] %s82_s1 }
  0x1b   :  { %vm52_vm0 = vcmp.lt.f32.partialorder %v44_v1, %v36_v0  ;;  %v46_v5 = vld [vmem:[#allocation5 + $0x10] sm:$0xff]  ;;  %vm53_vm1 = vcmp.lt.f32.partialorder %v45_v3, %v37_v2  ;;  %v39_v8 = vld [vmem:[#allocation2 + $0x18] sm:$0xff]  ;;  %v40_v10 = vld [vmem:[#allocation2 + $0x20] sm:$0xff]  ;;  %s136_s19 = scalar_lea.vmem %s83_s1, 1024  ;;  %p141_p11 = scmp.lt.s32.totalorder %s83_s1, %s83_s1 }
  0x1c   :  { %v60_v7 = vsel %vm52_vm0, 1.0, %v164_v6  ;;  %vm54_vm2 = vcmp.lt.f32.partialorder %v46_v5, %v38_v4  ;;  %v47_v9 = vld [vmem:[#allocation5 + $0x18] sm:$0xff]  ;;  %v61_v11 = vsel %vm53_vm1, 1.0, %v164_v6  ;;  %v48_v13 = vld [vmem:[#allocation5 + $0x20] sm:$0xff]  ;;  %v41_v14 = vld [vmem:[#allocation2 + $0x28] sm:$0xff]  ;;  %p137_p10 = scmp.ne.s32.totalorder %s83_s1, %s136_s19  ;;  %p142_p12 = scmp.lt.s32.totalorder %s136_s19, %s136_s19 }
  0x1d   :  { %68 = vst [vmem:[#allocation7] sm:$0xff] %v60_v7  ;;  %v62_v12 = vsel %vm54_vm2, 1.0, %v164_v6  ;;  %vm55_vm3 = vcmp.lt.f32.partialorder %v47_v9, %v39_v8  ;;  %v49_v15 = vld [vmem:[#allocation5 + $0x28] sm:$0xff]  ;;  %69 = vst [vmem:[#allocation7 + $0x8] sm:$0xff] %v61_v11  ;;  %vm56_vm4 = vcmp.lt.f32.partialorder %v48_v13, %v40_v10  ;;  %v42_v17 = vld [vmem:[#allocation2 + $0x30] sm:$0xff] }
  0x1e   :  { %70 = vst [vmem:[#allocation7 + $0x10] sm:$0xff] %v62_v12  ;;  %v63_v16 = vsel %vm55_vm3, 1.0, %v164_v6  ;;  %vm57_vm5 = vcmp.lt.f32.partialorder %v49_v15, %v41_v14  ;;  %v50_v18 = vld [vmem:[#allocation5 + $0x30] sm:$0xff]  ;;  %v43_v19 = vld [vmem:[#allocation2 + $0x38] sm:$0xff]  ;;  %v64_v20 = vsel %vm56_vm4, 1.0, %v164_v6  ;;  %p143_p13 = por %p142_p12, %p141_p11 }
  0x1f   :  { %71 = vst [vmem:[#allocation7 + $0x18] sm:$0xff] %v63_v16  ;;  %v65_v21 = vsel %vm57_vm5, 1.0, %v164_v6  ;;  %vm58_vm6 = vcmp.lt.f32.partialorder %v50_v18, %v42_v17  ;;  %v51_v22 = vld [vmem:[#allocation5 + $0x38] sm:$0xff]  ;;  %72 = vst [vmem:[#allocation7 + $0x20] sm:$0xff] %v64_v20 }
  0x20   :  { %73 = vst [vmem:[#allocation7 + $0x28] sm:$0xff] %v65_v21  ;;  %v66_v23 = vsel %vm58_vm6, 1.0, %v164_v6  ;;  %vm59_vm7 = vcmp.lt.f32.partialorder %v51_v22, %v43_v19  ;;  %p144_p0 = pnand %p143_p13, %p137_p10 }
  0x21   :  { %74 = vst [vmem:[#allocation7 + $0x30] sm:$0xff] %v66_v23  ;;  %v67_v24 = vsel %vm59_vm7, 1.0, %v164_v6 }
  0x22   :  { %75 = vst [vmem:[#allocation7 + $0x38] sm:$0xff] %v67_v24 }
  0x23   :  { %147 = shalt.err (!%p144_p0)
}
  0x24   :  { %85 = dma.vmem_to_hbm [thread:$0]  %s83_s1, 1024, %s192_s2, [#allocation4]  }
  0x25   :  { %160 = dma.done.wait [#allocation4], 1024  }
  0x26   :  { %161 = vsyncadd [#allocation4], 4294966272 }
  0x27   :  { %89 = vsyncpa [#allocation3], 1 }
  0x28   :  { %90 = vsyncpa [#allocation6], 1 }
  0x29   :  { %91 = vsyncpa [#allocation4], 1 }

</bundles_post_ra>
